<compile_context>
chip_gen: v6e
topology: v6e:2x2x1
jax: 0.10.0
libtpu: 0.0.40
codegen_flags: <defaults>
</compile_context>

<pallas_src>
import jax
import jax.numpy as jnp
from jax import lax
from jax.experimental import pallas as pl
from jax.experimental.pallas import tpu as pltpu


def _make_kernel(kH, kW, dil, Wp, tHo, Wo, cin_g, cout_g, out_dtype):
    Lacc = tHo * Wp  # accumulator length (padded-width output space)

    def kernel(x_ref, w_ref, o_ref):
        # x_ref: (1, 1, cin_g, L)       lane-dense flattened input window
        # w_ref: (kH*kW, cout_g, cin_g) one (cout_g, cin_g) matrix per tap
        # o_ref: (1, cout_g, tHo*Wo)    lane-dense output tile
        x = x_ref[0, 0]                                    # (cin_g, L)
        acc = None
        for kh in range(kH):
            for kw in range(kW):
                off = (kh * Wp + kw) * dil
                xs = x[:, off:off + Lacc]                  # (cin_g, tHo*Wp)
                wt = w_ref[kh * kW + kw]                   # (cout_g, cin_g)
                part = jnp.dot(wt, xs, preferred_element_type=jnp.float32)
                acc = part if acc is None else acc + part
        # Drop the padded-width garbage columns once; store lane-dense.
        valid = acc.reshape(cout_g, tHo, Wp)[:, :, :Wo]
        o_ref[0] = valid.reshape(cout_g, tHo * Wo).astype(out_dtype)

    return kernel


def _pick_tile_rows(Ho, Wo, Wp, halo_rows, cin_g, cout_g, itemsize,
                    budget_bytes):
    """Largest proper divisor of Ho whose tile fits the VMEM budget and whose
    flattened output block is a multiple of 128 lanes (unmasked stores)."""
    def step_bytes(t):
        L = (t + halo_rows) * Wp
        inp = 2 * cin_g * L * itemsize        # double-buffered input window
        out = 2 * cout_g * t * Wo * 4         # double-buffered output block
        acc = cout_g * t * Wp * 4             # f32 accumulator
        return inp + out + acc

    for t in range(Ho, 0, -1):
        if Ho % t != 0 or t >= Ho:
            continue
        if (t * Wo) % 128 == 0 and step_bytes(t) <= budget_bytes:
            return t
    # Fall back to whole-height tiles (block == full array dim, always legal).
    return Ho


def cdilated_forward(x_nchw, weight_oihw, *, kSize, stride=1, d=1, groups=1,
                     compute_dtype=jnp.bfloat16, tile_rows=None,
                     vmem_budget_bytes=8 << 20):
    """Matches nn.Conv2d(nIn, nOut, kSize, stride, padding=((kSize-1)//2)*d,
    dilation=d, groups=groups, bias=False) applied to NCHW input."""
    N, Cin, H, W = x_nchw.shape
    Cout, cin_g, kH, kW = weight_oihw.shape
    assert kH == kSize and kW == kSize
    assert cin_g == Cin // groups and Cout % groups == 0
    cout_g = Cout // groups
    out_dtype = x_nchw.dtype

    pad = ((kSize - 1) // 2) * d
    # Kernel computes the dense (stride=1) output; stride>1 subsamples after.
    Ho = H + 2 * pad - d * (kH - 1)
    Wo = W + 2 * pad - d * (kW - 1)
    assert Ho >= 1 and Wo >= 1
    Hp, Wp = H + 2 * pad, W + 2 * pad

    itemsize = jnp.dtype(compute_dtype).itemsize
    if tile_rows is None:
        tile_rows = _pick_tile_rows(Ho, Wo, Wp, (kH - 1) * d, cin_g, cout_g,
                                    itemsize, vmem_budget_bytes)
    tHo = tile_rows
    T = Ho // tHo

    # Flat window length so every tap is an in-bounds contiguous lane slice.
    L = tHo * Wp + (kH - 1) * d * Wp + (kW - 1) * d
    L = ((L + 127) // 128) * 128              # lane-align the window

    # ---- XLA glue (cheap relative to the conv itself) --------------------
    xc = x_nchw.astype(compute_dtype)
    # TODO(synk): fold zero-padding + halo windowing into in-kernel manual DMA
    # (make_async_copy with pl.ds row offsets) to avoid this extra HBM pass.
    x_pad = jnp.pad(xc, ((0, 0), (0, 0), (pad, pad), (pad, pad)))
    x_flat = x_pad.reshape(N, Cin, Hp * Wp)
    need = (T - 1) * tHo * Wp + L
    if need > Hp * Wp:
        x_flat = jnp.pad(x_flat, ((0, 0), (0, 0), (0, need - Hp * Wp)))
    win_idx = (jnp.arange(T) * (tHo * Wp))[:, None] + jnp.arange(L)[None, :]
    # (N, Cin, T, L) -> (N, T, Cin, L): per-tile halo windows, lane-dense.
    x_win = jnp.swapaxes(x_flat[:, :, win_idx], 1, 2)

    # Weight as one (cout_g, cin_g) matrix per tap: (kH*kW, Cout, cin_g).
    w_taps = jnp.transpose(weight_oihw, (2, 3, 0, 1)).reshape(
        kH * kW, Cout, cin_g).astype(compute_dtype)

    kernel = _make_kernel(kH, kW, d, Wp, tHo, Wo, cin_g, cout_g, out_dtype)

    cost = pl.CostEstimate(
        flops=2 * N * Cout * Ho * Wo * kH * kW * cin_g,
        transcendentals=0,
        bytes_accessed=(x_win.size * itemsize + w_taps.size * itemsize
                        + N * Cout * Ho * Wo * jnp.dtype(out_dtype).itemsize))

    out_flat = pl.pallas_call(
        kernel,
        out_shape=jax.ShapeDtypeStruct((N, Cout, Ho * Wo), out_dtype),
        grid_spec=pltpu.PrefetchScalarGridSpec(
            num_scalar_prefetch=0,
            grid=(N, groups, T),
            in_specs=[
                pl.BlockSpec((1, 1, cin_g, L), lambda n, g, t: (n, t, g, 0)),
                pl.BlockSpec((kH * kW, cout_g, cin_g),
                             lambda n, g, t: (0, g, 0)),
            ],
            out_specs=pl.BlockSpec((1, cout_g, tHo * Wo),
                                   lambda n, g, t: (n, g, t)),
        ),
        compiler_params=pltpu.CompilerParams(
            dimension_semantics=("parallel", "parallel", "parallel"),
            vmem_limit_bytes=32 * 1024 * 1024),
        cost_estimate=cost,
    )(x_win, w_taps)

    out = out_flat.reshape(N, Cout, Ho, Wo)
    if stride > 1:
        # TODO(synk): dedicated stride>1 path (this computes the dense output
        # and subsamples, wasting ~stride^2 compute, but is exact).
        out = out[:, :, ::stride, ::stride]
    return out


if __name__ == "__main__":
    # Module config (consistent with CDilated): nIn=4, nOut=8, kSize=3, d=2
    nIn, nOut, kSize, stride, d, groups = 4, 8, 3, 1, 2, 1
    N, H, W = 2, 16, 16

    key = jax.random.PRNGKey(0)
    kx, kw_ = jax.random.split(key)
    x = jax.random.normal(kx, (N, nIn, H, W), dtype=jnp.float32)

    # Deterministic kaiming-uniform-like init (Conv2d weight shape OIHW).
    fan_in = (nIn // groups) * kSize * kSize
    bound = 1.0 / float(fan_in) ** 0.5
    weight = jax.random.uniform(
        kw_, (nOut, nIn // groups, kSize, kSize),
        minval=-bound, maxval=bound, dtype=jnp.float32)

    out = cdilated_forward(x, weight, kSize=kSize, stride=stride, d=d,
                           groups=groups)
    out = jax.block_until_ready(out)

    # Reference: XLA conv on the same bf16-rounded operands (the kernel
    # computes with bf16 operands and f32 accumulation).
    xb = x.astype(jnp.bfloat16).astype(jnp.float32)
    wb = weight.astype(jnp.bfloat16).astype(jnp.float32)
    padding = ((kSize - 1) // 2) * d
    ref = lax.conv_general_dilated(
        xb, wb,
        window_strides=(stride, stride),
        padding=((padding, padding), (padding, padding)),
        rhs_dilation=(d, d),
        dimension_numbers=("NCHW", "OIHW", "NCHW"),
        feature_group_count=groups,
        precision=lax.Precision.HIGHEST)
    assert out.shape == ref.shape, (out.shape, ref.shape)
    err = float(jnp.max(jnp.abs(out.astype(jnp.float32) - ref)))
    assert err < 1e-3, err

    print("KERNEL_OK")
</pallas_src>

<mosaic_0001>
module attributes {stable_mosaic.version = 11 : i64} {
  func.func @kernel(%arg0: i32, %arg1: i32, %arg2: i32, %arg3: memref<1x1x4x256xbf16, #tpu.memory_space<vmem>>, %arg4: memref<9x8x4xbf16, #tpu.memory_space<vmem>>, %arg5: memref<1x8x128xf32, #tpu.memory_space<vmem>>) attributes {dimension_semantics = [#tpu.dimension_semantics<parallel>, #tpu.dimension_semantics<parallel>, #tpu.dimension_semantics<parallel>], iteration_bounds = array<i64: 2, 1, 2>, scalar_prefetch = 0 : i64, scratch_operands = 0 : i64, tpu.core_type = #tpu.core_type<tc>, window_params = [{transform_indices = @transform_0, window_bounds = array<i64: 1, 1, 4, 256>}, {transform_indices = @transform_1, window_bounds = array<i64: 9, 8, 4>}, {transform_indices = @transform_2, window_bounds = array<i64: 1, 8, 128>}]} {
    %c0 = arith.constant 0 : index
    %c0_0 = arith.constant 0 : index
    %c0_1 = arith.constant 0 : index
    %c0_2 = arith.constant 0 : index
    %0 = vector.load %arg3[%c0, %c0_0, %c0_1, %c0_2] : memref<1x1x4x256xbf16, #tpu.memory_space<vmem>>, vector<1x1x4x256xbf16>
    %1 = vector.shape_cast %0 : vector<1x1x4x256xbf16> to vector<4x256xbf16>
    %2 = vector.extract_strided_slice %1 {offsets = [0, 0], sizes = [4, 160], strides = [1, 1]} : vector<4x256xbf16> to vector<4x160xbf16>
    %c0_3 = arith.constant 0 : index
    %c0_4 = arith.constant 0 : index
    %c0_5 = arith.constant 0 : index
    %3 = vector.load %arg4[%c0_3, %c0_4, %c0_5] : memref<9x8x4xbf16, #tpu.memory_space<vmem>>, vector<1x8x4xbf16>
    %4 = vector.shape_cast %3 : vector<1x8x4xbf16> to vector<8x4xbf16>
    %cst = arith.constant dense<0.000000e+00> : vector<8x160xf32>
    %5 = tpu.matmul %4, %2, %cst {dimension_numbers = #tpu.dot_dimension_numbers<[1], [0], [0], [1], [0, 0, 1, 1], [], []>} : vector<8x4xbf16>, vector<4x160xbf16>, vector<8x160xf32> -> vector<8x160xf32>
    %6 = vector.extract_strided_slice %1 {offsets = [0, 2], sizes = [4, 160], strides = [1, 1]} : vector<4x256xbf16> to vector<4x160xbf16>
    %c1 = arith.constant 1 : index
    %c0_6 = arith.constant 0 : index
    %c0_7 = arith.constant 0 : index
    %7 = vector.load %arg4[%c1, %c0_6, %c0_7] : memref<9x8x4xbf16, #tpu.memory_space<vmem>>, vector<1x8x4xbf16>
    %8 = vector.shape_cast %7 : vector<1x8x4xbf16> to vector<8x4xbf16>
    %cst_8 = arith.constant dense<0.000000e+00> : vector<8x160xf32>
    %9 = tpu.matmul %8, %6, %cst_8 {dimension_numbers = #tpu.dot_dimension_numbers<[1], [0], [0], [1], [0, 0, 1, 1], [], []>} : vector<8x4xbf16>, vector<4x160xbf16>, vector<8x160xf32> -> vector<8x160xf32>
    %10 = arith.addf %5, %9 : vector<8x160xf32>
    %11 = vector.extract_strided_slice %1 {offsets = [0, 4], sizes = [4, 160], strides = [1, 1]} : vector<4x256xbf16> to vector<4x160xbf16>
    %c2 = arith.constant 2 : index
    %c0_9 = arith.constant 0 : index
    %c0_10 = arith.constant 0 : index
    %12 = vector.load %arg4[%c2, %c0_9, %c0_10] : memref<9x8x4xbf16, #tpu.memory_space<vmem>>, vector<1x8x4xbf16>
    %13 = vector.shape_cast %12 : vector<1x8x4xbf16> to vector<8x4xbf16>
    %cst_11 = arith.constant dense<0.000000e+00> : vector<8x160xf32>
    %14 = tpu.matmul %13, %11, %cst_11 {dimension_numbers = #tpu.dot_dimension_numbers<[1], [0], [0], [1], [0, 0, 1, 1], [], []>} : vector<8x4xbf16>, vector<4x160xbf16>, vector<8x160xf32> -> vector<8x160xf32>
    %15 = arith.addf %10, %14 : vector<8x160xf32>
    %16 = vector.extract_strided_slice %1 {offsets = [0, 40], sizes = [4, 160], strides = [1, 1]} : vector<4x256xbf16> to vector<4x160xbf16>
    %c3 = arith.constant 3 : index
    %c0_12 = arith.constant 0 : index
    %c0_13 = arith.constant 0 : index
    %17 = vector.load %arg4[%c3, %c0_12, %c0_13] : memref<9x8x4xbf16, #tpu.memory_space<vmem>>, vector<1x8x4xbf16>
    %18 = vector.shape_cast %17 : vector<1x8x4xbf16> to vector<8x4xbf16>
    %cst_14 = arith.constant dense<0.000000e+00> : vector<8x160xf32>
    %19 = tpu.matmul %18, %16, %cst_14 {dimension_numbers = #tpu.dot_dimension_numbers<[1], [0], [0], [1], [0, 0, 1, 1], [], []>} : vector<8x4xbf16>, vector<4x160xbf16>, vector<8x160xf32> -> vector<8x160xf32>
    %20 = arith.addf %15, %19 : vector<8x160xf32>
    %21 = vector.extract_strided_slice %1 {offsets = [0, 42], sizes = [4, 160], strides = [1, 1]} : vector<4x256xbf16> to vector<4x160xbf16>
    %c4 = arith.constant 4 : index
    %c0_15 = arith.constant 0 : index
    %c0_16 = arith.constant 0 : index
    %22 = vector.load %arg4[%c4, %c0_15, %c0_16] : memref<9x8x4xbf16, #tpu.memory_space<vmem>>, vector<1x8x4xbf16>
    %23 = vector.shape_cast %22 : vector<1x8x4xbf16> to vector<8x4xbf16>
    %cst_17 = arith.constant dense<0.000000e+00> : vector<8x160xf32>
    %24 = tpu.matmul %23, %21, %cst_17 {dimension_numbers = #tpu.dot_dimension_numbers<[1], [0], [0], [1], [0, 0, 1, 1], [], []>} : vector<8x4xbf16>, vector<4x160xbf16>, vector<8x160xf32> -> vector<8x160xf32>
    %25 = arith.addf %20, %24 : vector<8x160xf32>
    %26 = vector.extract_strided_slice %1 {offsets = [0, 44], sizes = [4, 160], strides = [1, 1]} : vector<4x256xbf16> to vector<4x160xbf16>
    %c5 = arith.constant 5 : index
    %c0_18 = arith.constant 0 : index
    %c0_19 = arith.constant 0 : index
    %27 = vector.load %arg4[%c5, %c0_18, %c0_19] : memref<9x8x4xbf16, #tpu.memory_space<vmem>>, vector<1x8x4xbf16>
    %28 = vector.shape_cast %27 : vector<1x8x4xbf16> to vector<8x4xbf16>
    %cst_20 = arith.constant dense<0.000000e+00> : vector<8x160xf32>
    %29 = tpu.matmul %28, %26, %cst_20 {dimension_numbers = #tpu.dot_dimension_numbers<[1], [0], [0], [1], [0, 0, 1, 1], [], []>} : vector<8x4xbf16>, vector<4x160xbf16>, vector<8x160xf32> -> vector<8x160xf32>
    %30 = arith.addf %25, %29 : vector<8x160xf32>
    %31 = vector.extract_strided_slice %1 {offsets = [0, 80], sizes = [4, 160], strides = [1, 1]} : vector<4x256xbf16> to vector<4x160xbf16>
    %c6 = arith.constant 6 : index
    %c0_21 = arith.constant 0 : index
    %c0_22 = arith.constant 0 : index
    %32 = vector.load %arg4[%c6, %c0_21, %c0_22] : memref<9x8x4xbf16, #tpu.memory_space<vmem>>, vector<1x8x4xbf16>
    %33 = vector.shape_cast %32 : vector<1x8x4xbf16> to vector<8x4xbf16>
    %cst_23 = arith.constant dense<0.000000e+00> : vector<8x160xf32>
    %34 = tpu.matmul %33, %31, %cst_23 {dimension_numbers = #tpu.dot_dimension_numbers<[1], [0], [0], [1], [0, 0, 1, 1], [], []>} : vector<8x4xbf16>, vector<4x160xbf16>, vector<8x160xf32> -> vector<8x160xf32>
    %35 = arith.addf %30, %34 : vector<8x160xf32>
    %36 = vector.extract_strided_slice %1 {offsets = [0, 82], sizes = [4, 160], strides = [1, 1]} : vector<4x256xbf16> to vector<4x160xbf16>
    %c7 = arith.constant 7 : index
    %c0_24 = arith.constant 0 : index
    %c0_25 = arith.constant 0 : index
    %37 = vector.load %arg4[%c7, %c0_24, %c0_25] : memref<9x8x4xbf16, #tpu.memory_space<vmem>>, vector<1x8x4xbf16>
    %38 = vector.shape_cast %37 : vector<1x8x4xbf16> to vector<8x4xbf16>
    %cst_26 = arith.constant dense<0.000000e+00> : vector<8x160xf32>
    %39 = tpu.matmul %38, %36, %cst_26 {dimension_numbers = #tpu.dot_dimension_numbers<[1], [0], [0], [1], [0, 0, 1, 1], [], []>} : vector<8x4xbf16>, vector<4x160xbf16>, vector<8x160xf32> -> vector<8x160xf32>
    %40 = arith.addf %35, %39 : vector<8x160xf32>
    %41 = vector.extract_strided_slice %1 {offsets = [0, 84], sizes = [4, 160], strides = [1, 1]} : vector<4x256xbf16> to vector<4x160xbf16>
    %c8 = arith.constant 8 : index
    %c0_27 = arith.constant 0 : index
    %c0_28 = arith.constant 0 : index
    %42 = vector.load %arg4[%c8, %c0_27, %c0_28] : memref<9x8x4xbf16, #tpu.memory_space<vmem>>, vector<1x8x4xbf16>
    %43 = vector.shape_cast %42 : vector<1x8x4xbf16> to vector<8x4xbf16>
    %cst_29 = arith.constant dense<0.000000e+00> : vector<8x160xf32>
    %44 = tpu.matmul %43, %41, %cst_29 {dimension_numbers = #tpu.dot_dimension_numbers<[1], [0], [0], [1], [0, 0, 1, 1], [], []>} : vector<8x4xbf16>, vector<4x160xbf16>, vector<8x160xf32> -> vector<8x160xf32>
    %45 = arith.addf %40, %44 : vector<8x160xf32>
    %46 = vector.shape_cast %45 : vector<8x160xf32> to vector<8x8x20xf32>
    %47 = vector.extract_strided_slice %46 {offsets = [0, 0, 0], sizes = [8, 8, 16], strides = [1, 1, 1]} : vector<8x8x20xf32> to vector<8x8x16xf32>
    %48 = vector.shape_cast %47 : vector<8x8x16xf32> to vector<8x128xf32>
    %c0_30 = arith.constant 0 : index
    %c0_31 = arith.constant 0 : index
    %c0_32 = arith.constant 0 : index
    %49 = vector.load %arg5[%c0_30, %c0_31, %c0_32] : memref<1x8x128xf32, #tpu.memory_space<vmem>>, vector<1x8x128xf32>
    %50 = vector.shape_cast %49 : vector<1x8x128xf32> to vector<8x128xf32>
    %51 = vector.shape_cast %48 : vector<8x128xf32> to vector<1x8x128xf32>
    tpu.vector_store %arg5[%c0_30, %c0_31, %c0_32], %51 {strides = array<i32>} : memref<1x8x128xf32, #tpu.memory_space<vmem>>, vector<1x8x128xf32>,
    return
  }
  func.func @transform_0(%arg0: i32, %arg1: i32, %arg2: i32) -> (i32, i32, i32, i32) {
    %c0_i32 = arith.constant 0 : i32
    %c0_i32_0 = arith.constant 0 : i32
    return %arg0, %arg2, %arg1, %c0_i32 : i32, i32, i32, i32
  }
  func.func @transform_1(%arg0: i32, %arg1: i32, %arg2: i32) -> (i32, i32, i32) {
    %c0_i32 = arith.constant 0 : i32
    %c0_i32_0 = arith.constant 0 : i32
    %c0_i32_1 = arith.constant 0 : i32
    return %c0_i32, %arg1, %c0_i32_0 : i32, i32, i32
  }
  func.func @transform_2(%arg0: i32, %arg1: i32, %arg2: i32) -> (i32, i32, i32) {
    %c0_i32 = arith.constant 0 : i32
    return %arg0, %arg1, %arg2 : i32, i32, i32
  }
}

</mosaic_0001>

<bundles_post_ra>
// kernel: tpu_custom_call.1
= control target key start
LH: loop header
LB: loop body
LE: loop exit
PB: predicated region body
PF: predicated region fallthrough
CT: control target
= control target key end

     0   :  { %7 = vsyncpa [#allocation3], 0  ;;  %s1732_s0 = inlined_call_operand.vmem [shape: bf16[2,2,4,256], index: 0, kind: input, shape index: {}]   ;;  %s1733_s1 = inlined_call_operand.vmem [shape: bf16[9,8,4], index: 1, kind: input, shape index: {}]   ;;  %s1734_s2 = inlined_call_operand.hbm [shape: f32[2,8,256], index: 2, kind: output, shape index: {}]  }
   0x1   :  { %9 = vsyncpa [#allocation3 + $0x1], 0  ;;  %s1494_s9 = smov 0   ;;  %s1496_s10 = smov 0  }
   0x2   :  { %s1498_s11 = smov 0   ;;  %s1500_s12 = smov 0  }
   0x3   :  { %s1502_s13 = smov 0   ;;  %s1504_s14 = smov 0  }
   0x4   :  { %s1506_s15 = smov 0   ;;  %s1508_s16 = smov 0  }
   0x5 LB: > { %s1219_s17 = sadd.s32 4294967295, %s1454_s16   ;;  %s1220_s18 = sadd.s32 4294967294, %s1454_s16   ;;  %s1454_s16 = sphi %s1508_s16, %s15_s16   ;;  %s1450_s15 = sphi %s1506_s15, %s1743_s15   ;;  %s1446_s14 = sphi %s1504_s14, %s1742_s14   ;;  %s1442_s13 = sphi %s1502_s13, %s1741_s13   ;;  %s1438_s12 = sphi %s1500_s12, %s1740_s12   ;;  %s1434_s11 = sphi %s1498_s11, %s1739_s11   ;;  %s1430_s10 = sphi %s1496_s10, %s1738_s10   ;;  %s1426_s9 = sphi %s1494_s9, %s1737_s9  }
   0x6   : > { %s27_s19 = sadd.s32 1, %s1446_s14  ;;  %s34_s20 = sadd.s32 1, %s1450_s15 }
   0x7   : > { %p28_p0 = scmp.ge.s32.totalorder %s27_s19, 2  ;;  %p111_p1 = scmp.ne.s32.totalorder %s1434_s11, %s1430_s10 }
   0x8   : > { %p112_p2 = scmp.eq.s32.totalorder %s1219_s17, 3  ;;  %p117_p5 = scmp.ne.s32.totalorder %s1430_s10, %s1426_s9 }
   0x9   : > { %s1745_s19 = smov (%p28_p0, %s27_s19), 0  ;;  %s1747_s20 = smov (!%p28_p0, %s34_s20), %s1450_s15 }
   0xa   : > { %s97_s21 = ssub.s32 %s1446_s14, %s1745_s19  ;;  %p1545_p3 = por %p112_p2, %p111_p1 }
   0xb   : > { %p36_p4 = scmp.ge.s32.totalorder %s1747_s20, 2  ;;  %p118_p6 = scmp.eq.s32.totalorder %s1220_s18, 3 }
   0xc   : > { %p1224_p7 = scmp.ge.s32.totalorder %s1454_s16, 1  ;;  %p159_p9 = scmp.lt.s32.totalorder %s1454_s16, 5 }
   0xd   : > { %s1749_s20 = smov (%p36_p4, %s1747_s20), 0  ;;  %p1554_p8 = por %p118_p6, %p117_p5 }
   0xe   : > { %s94_s24 = ssub.s32 %s1450_s15, %s1749_s20  ;;  %s101_s25 = sadd.s32 1, %s1434_s11 }
   0xf   : > { %s98_s26 = sor.u32 %s97_s21, %s94_s24  ;;  %p160_p10 = pnand %p1224_p7, %p159_p9 }
  0x10   : > { %p99_p11 = scmp.eq.s32.totalorder %s98_s26, 0  ;;  %p193_p12 = scmp.lt.s32.totalorder (!%p160_p10), %s1442_s13, 1 }
  0x11   : > { %163 = sbr.rel (%p160_p10) target bundleno = 661 (0x295), region = 28  ;;  %p195_p13 = scmp.lt.s32.totalorder (!%p160_p10), %s1438_s12, 1 }
  0x12   : > { %s1563_s27 = scalar_select %p99_p11, %s1434_s11, %s101_s25  }
  0x13   : > { %s1457_s17 = smov (!%p160_p10), 124   ;;  %s1458_s18 = smov (!%p160_p10), 126  }
  0x14   : > { %s1459_s25 = smov (!%p160_p10), 88   ;;  %s1460_s26 = smov (!%p160_p10), 86  }
  0x15   : > { %s1465_s7 = smov (!%p160_p10), 108   ;;  %s1469_s21 = smov (!%p160_p10), 28  }
  0x16   : > { %s194_s28 = scalar_select %p193_p12, %s1442_s13, 1  ;;  %v1456_v0 = vmov 0   ;;  %vm234_vm0 = vcmask 1041408   ;;  %vm230_vm1 = vcmask 31744   ;;  %v212_v4 = vld [vmem:[%s1733_s1] sm:$0xf] }
  0x17   : > { %s196_s29 = scalar_select %p195_p13, %s1438_s12, 1  ;;  %273 = vmatprep.mubr.bf16.mxu0 %v1456_v0  ;;  %323 = vmatprep.mubr.bf16.mxu1 %v1456_v0  ;;  %vm338_vm2 = vcmask 1014784   ;;  %vm228_vm3 = vcmask 1031168   ;;  %vm398_vm4 = vcmask 719872   ;;  %v1229_v12 = vld [vmem:[%s1733_s1 + $0x4] sm:$0xf] }
  0x18   : > { %s1227_s30 = sshll.u32 %s194_s28, 2  ;;  %s1461_s28 = smov 84   ;;  %vm458_vm5 = vcmask 703488   ;;  %v1238_v18 = vld [vmem:[%s1733_s1 + $0xc] sm:$0xf]  ;;  %vm518_vm6 = vcmask 687104  }
  0x19   : > { %s1226_s3 = sshll.u32 %s196_s29, 1  ;;  %s1462_s29 = smov 48   ;;  %v1235_v22 = vld [vmem:[%s1733_s1 + $0x8] sm:$0xf]  ;;  %vm578_vm7 = vcmask 392192   ;;  %vm638_vm8 = vcmask 375808  }
  0x1a   : > { %s203_s4 = sadd.s32 %s1227_s30, %s1226_s3  ;;  %s1463_s30 = smov 46   ;;  %v1244_v28 = vld [vmem:[%s1733_s1 + $0x14] sm:$0xf]  ;;  %v1241_v32 = vld [vmem:[%s1733_s1 + $0x10] sm:$0xf]  ;;  %vm698_vm9 = vcmask 359424  }
  0x1b   : > { %s1228_s5 = sshll.u32 %s203_s4, 1  ;;  %s1464_s3 = smov 44   ;;  %v1250_v38 = vld [vmem:[%s1733_s1 + $0x1c] sm:$0xf]  ;;  %v1247_v42 = vld [vmem:[%s1733_s1 + $0x18] sm:$0xf] }
  0x1c   : > { %s205_s8 = scalar_lea.vmem %s1732_s0, %s1228_s5  ;;  %v1253_v44 = vld [vmem:[%s1733_s1 + $0x20] sm:$0xf]  ;;  %vm773_vm10 = vcmask 64512   ;;  %s1473_s24 = smov 16   ;;  %vm1079_vm11 = vcmask 130048   ;;  %vm1081_vm12 = vcmask 261120  }
  0x1d   : > { %v1230_v1 = vld.sshfl [vmem:[%s205_s8] sm:$0x33 pattern:$0x76325410]  ;;  %s1466_s8 = smov 8   ;;  %s1265_s5 = sshll.u32 %s1442_s13, 1 }
  0x1e   : > { %334 = vrot.lane.b32.xlu1 %v1230_v1, %s1457_s17  ;;  %224 = vrot.lane.b32.xlu0 %v1230_v1, %s1458_s18  ;;  %v223_v2 = vcombine.high %v1230_v1, %v1230_v1  ;;  %v286_v3 = vsel %vm234_vm0, %v1230_v1, 0  ;;  %vm1085_vm13 = vcmask 523264   ;;  %s1108_s6 = sadd.s32 %s1438_s12, %s1265_s5  ;;  %vm1087_vm14 = vcmask 654336  }
  0x1f   : > { %vm1089_vm15 = vcmask 785408  }
  0x20   : > { %1233 = vmatprep.subr.msk.bf16.mxu1 %vm234_vm0, %v223_v2 }
  0x21   : > { %306 = vmatpush1.bf16.msra.mxu1 %v286_v3 }
  0x22   : > { %336 = vrot.lane.b32.xlu1 %v223_v2, %s1457_s17  ;;  %226 = vrot.lane.b32.xlu0 %v223_v2, %s1458_s18  ;;  %s1467_s17 = smov 68   ;;  %s1468_s18 = smov 116  }
  0x24   : > { %1234 = vmatmul.mubr.msk.bf16.vlgmr.msra.gmra.mxu1 %vm230_vm1, %v212_v4 }
  0x25   : > { %441 = vmatprep.mubr.bf16.mxu1 %v1456_v0 }
  0x26   : > { %396 = vrot.lane.b32.xlu1 %v223_v2, %s1459_s25  ;;  %394 = vrot.lane.b32.xlu0 %v1230_v1, %s1459_s25 }
  0x2a   : > { %456 = vrot.lane.b32.xlu1 %v223_v2, %s1460_s26  ;;  %454 = vrot.lane.b32.xlu0 %v1230_v1, %s1460_s26  ;;  %s1474_s26 = smov 80  }
  0x2e   : > { %516 = vrot.lane.b32.xlu1 %v223_v2, %s1461_s28  ;;  %514 = vrot.lane.b32.xlu0 %v1230_v1, %s1461_s28  ;;  %s1475_s28 = smov 64  }
  0x32   : > { %576 = vrot.lane.b32.xlu1 %v223_v2, %s1462_s29  ;;  %574 = vrot.lane.b32.xlu0 %v1230_v1, %s1462_s29 }
  0x36   : > { %636 = vrot.lane.b32.xlu1 %v223_v2, %s1463_s30  ;;  %634 = vrot.lane.b32.xlu0 %v1230_v1, %s1463_s30  ;;  %s1477_s30 = smov 96  }
  0x3a   : > { %696 = vrot.lane.b32.xlu1 %v223_v2, %s1464_s3  ;;  %694 = vrot.lane.b32.xlu0 %v1230_v1, %s1464_s3  ;;  %s190_s3 = sand.u32 1, %s1430_s10  }
  0x3b   : > { %s1225_s4 = sshll.u32 %s190_s3, 3 }
  0x90   : > { %v335_v5 = vpop.permute.xlu1 %334  ;;  %v225_v6 = vpop.permute.xlu0 %224 }
  0x94   : > { %v337_v7 = vpop.permute.xlu1 %336  ;;  %v227_v8 = vpop.permute.xlu0 %226 }
  0x95   : > { %v339_v9 = vsel %vm338_vm2, %v335_v5, %v337_v7  ;;  %1231 = vmatprep.subr.msk.bf16.mxu0 %vm234_vm0, %v227_v8  ;;  %v229_v10 = vsel %vm228_vm3, %v225_v6, %v227_v8 }
  0x96   : > { %v236_v11 = vsel %vm234_vm0, %v229_v10, 0  ;;  %v344_v13 = vsel %vm234_vm0, %v339_v9, 0 }
  0x97   : > { %256 = vmatpush1.bf16.msra.mxu0 %v236_v11 }
  0x98   : > { %1236 = vmatprep.subr.msk.bf16.mxu0 %vm234_vm0, %v337_v7  ;;  %v397_v14 = vpop.permute.xlu1 %396  ;;  %v395_v15 = vpop.permute.xlu0 %394 }
  0x99   : > { %v399_v16 = vsel %vm398_vm4, %v395_v15, %v397_v14  ;;  %1239 = vmatprep.subr.msk.bf16.mxu1 %vm234_vm0, %v397_v14 }
  0x9a   : > { %1232 = vmatmul.mubr.msk.bf16.vlgmr.msra.gmra.mxu0 %vm230_vm1, %v1229_v12  ;;  %v404_v17 = vsel %vm234_vm0, %v399_v16, 0 }
  0x9b   : > { %364 = vmatpush1.bf16.msra.mxu0 %v344_v13  ;;  %424 = vmatpush1.bf16.msra.mxu1 %v404_v17 }
  0x9c   : > { %v457_v19 = vpop.permute.xlu1 %456  ;;  %v455_v20 = vpop.permute.xlu0 %454  ;;  %381 = vmatprep.mubr.bf16.mxu0 %v1456_v0 }
  0x9d   : > { %v459_v21 = vsel %vm458_vm5, %v455_v20, %v457_v19  ;;  %1242 = vmatprep.subr.msk.bf16.mxu0 %vm234_vm0, %v457_v19 }
  0x9e   : > { %1240 = vmatmul.mubr.msk.bf16.vlgmr.msra.gmra.mxu1 %vm230_vm1, %v1238_v18  ;;  %v464_v23 = vsel %vm234_vm0, %v459_v21, 0 }
  0x9f   : > { %561 = vmatprep.mubr.bf16.mxu1 %v1456_v0 }
  0xa0   : > { %v517_v24 = vpop.permute.xlu1 %516  ;;  %v515_v25 = vpop.permute.xlu0 %514 }
  0xa1   : > { %v519_v26 = vsel %vm518_vm6, %v515_v25, %v517_v24  ;;  %1245 = vmatprep.subr.msk.bf16.mxu1 %vm234_vm0, %v517_v24 }
  0xa2   : > { %1237 = vmatmul.mubr.msk.bf16.vlgmr.msra.gmra.mxu0 %vm230_vm1, %v1235_v22  ;;  %v524_v27 = vsel %vm234_vm0, %v519_v26, 0 }
  0xa3   : > { %484 = vmatpush1.bf16.msra.mxu0 %v464_v23  ;;  %544 = vmatpush1.bf16.msra.mxu1 %v524_v27 }
  0xa4   : > { %v577_v29 = vpop.permute.xlu1 %576  ;;  %v575_v30 = vpop.permute.xlu0 %574  ;;  %501 = vmatprep.mubr.bf16.mxu0 %v1456_v0 }
  0xa5   : > { %v579_v31 = vsel %vm578_vm7, %v575_v30, %v577_v29  ;;  %1248 = vmatprep.subr.msk.bf16.mxu0 %vm234_vm0, %v577_v29 }
  0xa6   : > { %1246 = vmatmul.mubr.msk.bf16.vlgmr.msra.gmra.mxu1 %vm230_vm1, %v1244_v28  ;;  %v584_v33 = vsel %vm234_vm0, %v579_v31, 0 }
  0xa7   : > { %681 = vmatprep.mubr.bf16.mxu1 %v1456_v0 }
  0xa8   : > { %v637_v34 = vpop.permute.xlu1 %636  ;;  %v635_v35 = vpop.permute.xlu0 %634 }
  0xa9   : > { %v639_v36 = vsel %vm638_vm8, %v635_v35, %v637_v34  ;;  %1251 = vmatprep.subr.msk.bf16.mxu1 %vm234_vm0, %v637_v34  ;;  %v784_v35 = vlaneseq }
  0xaa   : > { %1243 = vmatmul.mubr.msk.bf16.vlgmr.msra.gmra.mxu0 %vm230_vm1, %v1241_v32  ;;  %v644_v37 = vsel %vm234_vm0, %v639_v36, 0  ;;  %v1471_v36 = vmov 1934713408  }
  0xab   : > { %604 = vmatpush1.bf16.msra.mxu0 %v584_v33  ;;  %664 = vmatpush1.bf16.msra.mxu1 %v644_v37  ;;  %v1470_v33 = vmov 1983009808   ;;  %v846_v37 = vunpack.c.l.s4 %v1471_v36 }
  0xac   : > { %v697_v39 = vpop.permute.xlu1 %696  ;;  %v695_v40 = vpop.permute.xlu0 %694  ;;  %621 = vmatprep.mubr.bf16.mxu0 %v1456_v0  ;;  %v782_v34 = vunpack.c.l.s4 %v1470_v33 }
  0xad   : > { %v699_v41 = vsel %vm698_vm9, %v695_v40, %v697_v39  ;;  %1254 = vmatprep.subr.msk.bf16.mxu0 %vm234_vm0, %v697_v39  ;;  %v785_v39 = vshrl.u32 %v784_v35, 7 }
  0xae   : > { %1252 = vmatmul.mubr.msk.bf16.vlgmr.msra.gmra.mxu1 %vm230_vm1, %v1250_v38  ;;  %v704_v43 = vsel %vm234_vm0, %v699_v41, 0  ;;  %v783_v38 = vunpack.c.0.s8 %v782_v34  ;;  %vm1091_vm0 = vcmask 916480  }
  0xb2   : > { %1249 = vmatmul.mubr.msk.bf16.vlgmr.msra.gmra.mxu0 %vm230_vm1, %v1247_v42  ;;  %v847_v42 = vunpack.c.0.s8 %v846_v37 }
  0xb3   : > { %724 = vmatpush1.bf16.msra.mxu0 %v704_v43  ;;  %741 = vmatprep.mubr.bf16.mxu0 %v1456_v0  ;;  %v1642_v43 = vsub.s32 %v783_v38, %v785_v39 }
  0xba   : > { %1255 = vmatmul.mubr.msk.bf16.vlgmr.msra.gmra.mxu0 %vm230_vm1, %v1253_v44 }
  0xe4   : > { %v325_v45 = vpop.f32.mrf.mxu1 }
  0xe6   : > { %v327_v46 = vpop.f32.mrf.mxu1 }
  0xe8   : > { %v329_v47 = vpop.f32.mrf.mxu1 }
  0xea   : > { %v330_v48 = vpop.f32.mrf.mxu1 }
 0x15a   : > { %v275_v49 = vpop.f32.mrf.mxu0 }
 0x15b   : > { %v326_v61 = vadd.f32 %v325_v45, %v275_v49 }
 0x15c   : > { %v277_v50 = vpop.f32.mrf.mxu0 }
 0x15d   : > { %v328_v8 = vadd.f32 %v327_v46, %v277_v50  ;;  %v1644_v50 = vsub.s32 %v847_v42, %v785_v39 }
 0x15e   : > { %v279_v51 = vpop.f32.mrf.mxu0  ;;  %v443_v52 = vpop.f32.mrf.mxu1 }
 0x160   : > { %v280_v53 = vpop.f32.mrf.mxu0  ;;  %v445_v54 = vpop.f32.mrf.mxu1 }
 0x162   : > { %v383_v55 = vpop.f32.mrf.mxu0  ;;  %v447_v56 = vpop.f32.mrf.mxu1 }
 0x163   : > { %v390_v0 = vadd.f32 %v383_v55, %v326_v61 }
 0x164   : > { %v385_v57 = vpop.f32.mrf.mxu0  ;;  %v448_v58 = vpop.f32.mrf.mxu1 }
 0x165   : > { %v450_v5 = vadd.f32 %v443_v52, %v390_v0  ;;  %v391_v12 = vadd.f32 %v385_v57, %v328_v8 }
 0x166   : > { %v387_v59 = vpop.f32.mrf.mxu0  ;;  %v563_v60 = vpop.f32.mrf.mxu1 }
 0x167   : > { %v451_v18 = vadd.f32 %v445_v54, %v391_v12 }
 0x168   : > { %v388_v62 = vpop.f32.mrf.mxu0  ;;  %v565_v63 = vpop.f32.mrf.mxu1 }
 0x16a   : > { %v503_v1 = vpop.f32.mrf.mxu0  ;;  %v567_v2 = vpop.f32.mrf.mxu1 }
 0x16b   : > { %v510_v9 = vadd.f32 %v503_v1, %v450_v5 }
 0x16c   : > { %v505_v3 = vpop.f32.mrf.mxu0  ;;  %v568_v4 = vpop.f32.mrf.mxu1 }
 0x16d   : > { %v570_v15 = vadd.f32 %v563_v60, %v510_v9  ;;  %v511_v21 = vadd.f32 %v505_v3, %v451_v18 }
 0x16e   : > { %v507_v6 = vpop.f32.mrf.mxu0  ;;  %v683_v7 = vpop.f32.mrf.mxu1 }
 0x16f   : > { %v571_v25 = vadd.f32 %v565_v63, %v511_v21 }
 0x170   : > { %v508_v10 = vpop.f32.mrf.mxu0  ;;  %v685_v11 = vpop.f32.mrf.mxu1 }
 0x172   : > { %v623_v13 = vpop.f32.mrf.mxu0  ;;  %v687_v14 = vpop.f32.mrf.mxu1 }
 0x173   : > { %v630_v19 = vadd.f32 %v623_v13, %v570_v15 }
 0x174   : > { %v625_v16 = vpop.f32.mrf.mxu0  ;;  %v688_v17 = vpop.f32.mrf.mxu1 }
 0x175   : > { %v690_v23 = vadd.f32 %v683_v7, %v630_v19  ;;  %v631_v28 = vadd.f32 %v625_v16, %v571_v25 }
 0x176   : > { %v627_v20 = vpop.f32.mrf.mxu0 }
 0x177   : > { %v691_v31 = vadd.f32 %v685_v11, %v631_v28 }
 0x178   : > { %v628_v22 = vpop.f32.mrf.mxu0 }
 0x17a   : > { %v743_v24 = vpop.f32.mrf.mxu0 }
 0x17b   : > { %v750_v26 = vadd.f32 %v743_v24, %v690_v23 }
 0x17c   : > { %v745_v27 = vpop.f32.mrf.mxu0 }
 0x17d   : > { %756 = vrot.lane.b32.xlu1 %v750_v26, %s1459_s25  ;;  %753 = vrot.lane.b32.xlu0 %v750_v26, %s1465_s7  ;;  %v751_v32 = vadd.f32 %v745_v27, %v691_v31  ;;  %s1472_s25 = smov 32   ;;  %s1266_s7 = sshll.u32 %s1108_s6, 7 }
 0x17e   : > { %v747_v29 = vpop.f32.mrf.mxu0  ;;  %s1686_s12 = scalar_lea.hbm %s1734_s2, %s1266_s7 }
 0x180   : > { %v748_v30 = vpop.f32.mrf.mxu0 }
 0x181   : > { %769 = vrot.lane.b32.xlu1 %v750_v26, %s1466_s8  ;;  %759 = vrot.lane.b32.xlu0 %v750_v26, %s1467_s17 }
 0x185   : > { %762 = vrot.lane.b32.xlu1 %v750_v26, %s1462_s29  ;;  %771 = vrot.lane.b32.xlu0 %v751_v32, %s1466_s8  ;;  %s192_s8 = scalar_lea.vmem [#allocation2], %s1225_s4 }
 0x186   : > { %s1112_s17 = sshll.u32 %s192_s8, 4  ;;  %s1113_s17 = int_to_ptr.vmem [resolvable:$true] %s1112_s17 }
 0x189   : > { %776 = vrot.lane.b32.xlu1 %v751_v32, %s1468_s18  ;;  %765 = vrot.lane.b32.xlu0 %v750_v26, %s1469_s21  ;;  %s1095_s21 = scalar_lea.sflag [#allocation3], %s190_s3 }
 0x1ef   : > { %v757_v40 = vpop.permute.xlu1 %756  ;;  %v754_v41 = vpop.permute.xlu0 %753 }
 0x1f0   : > { %v779_v44 = vcombine.low %v750_v26, %v757_v40  ;;  %v780_v45 = vcombine.high %v750_v26, %v757_v40 }
 0x1f2   : > { %v787_v51 = vrot.slane %v779_v44, %v1642_v43  ;;  %v794_v52 = vrot.slane %v780_v45, %v1642_v43 }
 0x1f3   : > { %v770_v46 = vpop.permute.xlu1 %769  ;;  %v760_v47 = vpop.permute.xlu0 %759 }
 0x1f4   : > { %v795_v48 = vcombine.low %v754_v41, %v760_v47  ;;  %v796_v49 = vcombine.high %v754_v41, %v760_v47 }
 0x1f6   : > { %v803_v53 = vrot.slane %v795_v48, %v1642_v43  ;;  %v810_v54 = vrot.slane %v796_v49, %v1642_v43 }
 0x1f7   : > { %v763_v55 = vpop.permute.xlu1 %762  ;;  %v772_v56 = vpop.permute.xlu0 %771 }
 0x1f8   : > { %v843_v57 = vcombine.low %v787_v51, %v803_v53  ;;  %v844_v58 = vcombine.high %v787_v51, %v803_v53  ;;  %v859_v59 = vcombine.low %v794_v52, %v810_v54  ;;  %v860_v60 = vcombine.high %v794_v52, %v810_v54 }
 0x1f9   : > { %v774_v61 = vsel %vm773_vm10, %v770_v46, %v772_v56 }
 0x1fa   : > { %v851_v62 = vrot.slane %v843_v57, %v1644_v50  ;;  %v858_v63 = vrot.slane %v844_v58, %v1644_v50  ;;  %v867_v0 = vrot.slane %v859_v59, %v1644_v50  ;;  %v874_v1 = vrot.slane %v860_v60, %v1644_v50 }
 0x1fb   : > { %v811_v2 = vcombine.low %v763_v55, %v774_v61  ;;  %v812_v3 = vcombine.high %v763_v55, %v774_v61  ;;  %v777_v4 = vpop.permute.xlu1 %776  ;;  %v766_v5 = vpop.permute.xlu0 %765 }
 0x1fc   : > { %v1256_v6 = vcombine.low %v851_v62, %v858_v63  ;;  %v1258_v7 = vcombine.high %v851_v62, %v858_v63  ;;  %v1260_v8 = vcombine.low %v867_v0, %v874_v1  ;;  %v1262_v9 = vcombine.high %v867_v0, %v874_v1 }
 0x1fd   : > { %v827_v10 = vcombine.low %v766_v5, %v777_v4  ;;  %v828_v11 = vcombine.high %v766_v5, %v777_v4  ;;  %v819_v16 = vrot.slane %v811_v2, %v1642_v43  ;;  %v826_v17 = vrot.slane %v812_v3, %v1642_v43 }
 0x1fe   : > { %v923_v12 = vrot.slane %v1256_v6, %v1642_v43  ;;  %v939_v13 = vrot.slane %v1258_v7, %v1642_v43  ;;  %v955_v14 = vrot.slane %v1260_v8, %v1642_v43  ;;  %v971_v15 = vrot.slane %v1262_v9, %v1642_v43 }
 0x1ff   : > { %v835_v18 = vrot.slane %v827_v10, %v1642_v43  ;;  %v842_v19 = vrot.slane %v828_v11, %v1642_v43 }
 0x200   : > { %v980_v20 = vcombine.high %v923_v12, %v939_v13  ;;  %v1012_v21 = vcombine.high %v955_v14, %v971_v15  ;;  %v979_v22 = vcombine.low %v923_v12, %v939_v13  ;;  %v1011_v23 = vcombine.low %v955_v14, %v971_v15 }
 0x201   : > { %v875_v24 = vcombine.low %v819_v16, %v835_v18  ;;  %v876_v25 = vcombine.high %v819_v16, %v835_v18  ;;  %v891_v26 = vcombine.low %v826_v17, %v842_v19  ;;  %v892_v27 = vcombine.high %v826_v17, %v842_v19 }
 0x202   : > { %v994_v28 = vrot.slane %v980_v20, %v1644_v50  ;;  %v1026_v29 = vrot.slane %v1012_v21, %v1644_v50  ;;  %v987_v30 = vrot.slane %v979_v22, %v1644_v50  ;;  %v1019_v31 = vrot.slane %v1011_v23, %v1644_v50 }
 0x203   : > { %v883_v32 = vrot.slane %v875_v24, %v1644_v50  ;;  %v890_v33 = vrot.slane %v876_v25, %v1644_v50  ;;  %v899_v34 = vrot.slane %v891_v26, %v1644_v50  ;;  %v906_v35 = vrot.slane %v892_v27, %v1644_v50 }
 0x204   : > { %v1045_v36 = vcombine.low %v994_v28, %v1026_v29  ;;  %v1044_v37 = vcombine.high %v987_v30, %v1019_v31  ;;  %v1043_v38 = vcombine.low %v987_v30, %v1019_v31  ;;  %v1046_v48 = vcombine.high %v994_v28, %v1026_v29 }
 0x205   : > { %v1257_v39 = vcombine.low %v883_v32, %v890_v33  ;;  %v1259_v40 = vcombine.high %v883_v32, %v890_v33  ;;  %v1261_v41 = vcombine.low %v899_v34, %v906_v35  ;;  %v1263_v42 = vcombine.high %v899_v34, %v906_v35 }
 0x206   : > { %1056 = vrot.lane.b32.xlu1 %v1045_v36, %s1472_s25  ;;  %1052 = vrot.lane.b32.xlu0 %v1044_v37, %s1473_s24  ;;  %s1362_s25 = scalar_lea.vmem %s1113_s17, 128  ;;  %s1478_s24 = smov [#allocation2]  }
 0x207   : > { %v930_v44 = vrot.slane %v1257_v39, %v1642_v43  ;;  %v946_v45 = vrot.slane %v1259_v40, %v1642_v43  ;;  %v962_v46 = vrot.slane %v1261_v41, %v1642_v43  ;;  %v978_v47 = vrot.slane %v1263_v42, %v1642_v43  ;;  %p1363_p0 = scmp.ne.s32.totalorder %s1113_s17, %s1362_s25 }
 0x209   : > { %v995_v49 = vcombine.low %v930_v44, %v946_v45  ;;  %v1027_v51 = vcombine.low %v962_v46, %v978_v47  ;;  %v996_v52 = vcombine.high %v930_v44, %v946_v45  ;;  %v1028_v53 = vcombine.high %v962_v46, %v978_v47  ;;  %p1364_p1 = pnand %p1363_p0, %p1545_p3 }
 0x20a   : > { %1060 = vrot.lane.b32.xlu0 %v1046_v48, %s1462_s29  ;;  %s1476_s29 = smov 112  }
 0x20b   : > { %v1003_v54 = vrot.slane %v995_v49, %v1644_v50  ;;  %v1035_v55 = vrot.slane %v1027_v51, %v1644_v50  ;;  %v1010_v58 = vrot.slane %v996_v52, %v1644_v50  ;;  %v1042_v59 = vrot.slane %v1028_v53, %v1644_v50  ;;  %p1365_p2 = pneg %p1364_p1 }
 0x20d   : > { %v1048_v56 = vcombine.high %v1003_v54, %v1035_v55  ;;  %v1047_v57 = vcombine.low %v1003_v54, %v1035_v55  ;;  %v1050_v43 = vcombine.high %v1010_v58, %v1042_v59  ;;  %v1049_v60 = vcombine.low %v1010_v58, %v1042_v59 }
 0x20f   : > { %1068 = vrot.lane.b32.xlu0 %v1048_v56, %s1474_s26  ;;  %1064 = vrot.lane.b32.xlu1 %v1047_v57, %s1475_s28  ;;  %s1366_s26 = sshll.u32 %s1478_s24, 4  ;;  %s1367_s26 = int_to_ptr.vmem [resolvable:$false] %s1366_s26 }
 0x210   : > { %s1368_s28 = scalar_lea.vmem %s1367_s26, 256  ;;  %p1369_p4 = scmp.lt.s32.totalorder %s1113_s17, %s1367_s26 }
 0x211   : > { %p1370_p5 = scmp.lt.s32.totalorder %s1368_s28, %s1362_s25 }
 0x213   : > { %1076 = vrot.lane.b32.xlu0 %v1050_v43, %s1476_s29  ;;  %1072 = vrot.lane.b32.xlu1 %v1049_v60, %s1477_s30  ;;  %p1371_p6 = por %p1370_p5, %p1369_p4 }
 0x215   : > { %p1372_p7 = pnand %p1371_p6, %p1365_p2 }
 0x278   : > { %v1053_v61 = vpop.permute.xlu0 %1052  ;;  %v1057_v63 = vpop.permute.xlu1 %1056 }
 0x279   : > { %v1080_v0 = vsel %vm1079_vm11, %v1043_v38, %v1053_v61 }
 0x27a   : > { %v1082_v50 = vsel %vm1081_vm12, %v1080_v0, %v1057_v63 }
 0x27c   : > { %v1061_v62 = vpop.permute.xlu0 %1060 }
 0x27d   : > { %v1084_v1 = vsel %vm578_vm7, %v1082_v50, %v1061_v62 }
 0x281   : > { %v1065_v2 = vpop.permute.xlu1 %1064  ;;  %v1069_v3 = vpop.permute.xlu0 %1068 }
 0x282   : > { %v1086_v4 = vsel %vm1085_vm13, %v1084_v1, %v1065_v2 }
 0x283   : > { %v1088_v5 = vsel %vm1087_vm14, %v1086_v4, %v1069_v3 }
 0x285   : > { %v1073_v6 = vpop.permute.xlu1 %1072  ;;  %v1077_v7 = vpop.permute.xlu0 %1076 }
 0x286   : > { %v1090_v8 = vsel %vm1089_vm15, %v1088_v5, %v1073_v6 }
 0x287   : > { %v1092_v9 = vsel %vm1091_vm0, %v1090_v8, %v1077_v7 }
 0x288   : > { %1093 = vst [vmem:[%s192_s8] sm:$0xff] %v1092_v9 }
 0x289   : > { %1375 = shalt.err (!%p1372_p7)
}
 0x28a   : > { %s1376_s29 = scalar_lea.hbm %s1686_s12, 128  ;;  %s1380_s4 = scalar_lea.hbm %s1734_s2, 512 }
 0x28b   : > { %p1377_p9 = scmp.ne.s32.totalorder %s1686_s12, %s1376_s29  ;;  %p1381_p12 = scmp.lt.s32.totalorder %s1686_s12, %s1734_s2 }
 0x28c   : > { %p1382_p13 = scmp.lt.s32.totalorder %s1380_s4, %s1376_s29 }
 0x28d   : > { %p1378_p10 = pnand %p1377_p9, %p1545_p3 }
 0x28e   : > { %p1383_p0 = por %p1382_p13, %p1381_p12 }
 0x28f   : > { %p1379_p11 = pneg %p1378_p10 }
 0x291   : > { %p1384_p1 = pnand %p1383_p0, %p1379_p11 }
 0x293   : > { %1387 = shalt.err (!%p1384_p1)
}
 0x294   : > { %1269 = dma.vmem_to_hbm [thread:$0]  (%p1545_p3), %s1113_s17, 128, %s1686_s12, %s1095_s21  }
 0x295 PF: > { %p1275_p2 = scmp.ge.s32.totalorder %s1454_s16, 2  ;;  %s1124_s7 = sand.u32 1, %s1426_s9  }
 0x296   : > { %s1125_s8 = scalar_lea.sflag [#allocation3], %s1124_s7 }
 0x297   : > { %p1272_p4 = pnand %p1275_p2, %p1554_p8 }
 0x299   : > { %p1273_p5 = pneg %p1272_p4 }
 0x29b   : > { %1421 = dma.done.wait (%p1273_p5), %s1125_s8, 128  }
 0x29c   : > { %1423 = vsyncadd (%p1273_p5), %s1125_s8, 4294967168  ;;  %s15_s16 = sadd.s32 1, %s1454_s16   ;;  %s1737_s9 = smov %s1430_s10 }
 0x29d   : > { %p12_p6 = scmp.ge.s32.totalorder %s15_s16, 6   ;;  %s1738_s10 = smov %s1434_s11 }
 0x29e   : > { %s1739_s11 = smov %s1563_s27  ;;  %s1740_s12 = smov %s1446_s14 }
 0x29f   : > { %s1741_s13 = smov %s1450_s15  ;;  %s1742_s14 = smov %s1745_s19 }
 0x2a0   : > { %s1743_s15 = smov %s1749_s20  ;;  %14 = sbr.rel (!%p12_p6) target bundleno = 5 (0x5), region = 74 }
 0x2a5   :  { %1130 = vsyncpa [#allocation3], 1 }
 0x2a6   :  { %1132 = vsyncpa [#allocation3 + $0x1], 1 }

</bundles_post_ra>
